<compile_context>
chip_gen: v6e
topology: v6e:2x2x1
jax: 0.10.0
libtpu: 0.0.40
codegen_flags: <defaults>
</compile_context>

<pallas_src>
import math

import jax
import jax.numpy as jnp
from jax.experimental import pallas as pl
from jax.experimental.pallas import tpu as pltpu

IN_DIM = 63
HIDDEN = 128
OUT_DIM = 3
DEFAULT_MAX_TILE_B = 4096   # per-step batch tile cap (~12 MiB VMEM @ 4096, safe on v5e/v6e/v7x)
MIN_SPLIT_B = 1024          # if B >= this, force >= 2 grid steps (v7x dual-TensorCore)


def _round_up(x, m):
    return ((x + m - 1) // m) * m


def _choose_grid(B, max_tile=DEFAULT_MAX_TILE_B):
    """Pick (tile_b, num_steps): tile_b multiple of 16, padding waste bounded to
    < one small tile, and >= 2 steps for large B so both v7x cores are used."""
    n = max(1, math.ceil(B / max_tile))
    if B >= MIN_SPLIT_B:
        n = max(n, 2)
    tile_b = _round_up(math.ceil(B / n), 16)
    n = max(1, math.ceil(B / tile_b))
    return tile_b, n


def mlp_kernel(x_ref, w1_ref, b1_ref, w2_ref, b2_ref, w3_ref, b3_ref, o_ref):
    # fc1 + relu: cast f32 input tile to bf16 in-kernel, MXU matmul, f32 accumulate.
    x = x_ref[...].astype(jnp.bfloat16)
    h = jnp.dot(x, w1_ref[...], preferred_element_type=jnp.float32)
    h = jnp.maximum(h + b1_ref[...], 0.0)
    # fc2 + relu
    h = jnp.dot(h.astype(jnp.bfloat16), w2_ref[...],
                preferred_element_type=jnp.float32)
    h = jnp.maximum(h + b2_ref[...], 0.0)
    # fc3 -- narrow (3-wide) output; masked stores are negligible here.
    h = jnp.dot(h.astype(jnp.bfloat16), w3_ref[...],
                preferred_element_type=jnp.float32)
    o_ref[...] = (h + b3_ref[...]).astype(o_ref.dtype)


def mlp_forward(x, params, max_tile_b=DEFAULT_MAX_TILE_B):
    """x: [B, 63] float32 -> [B, 3] float32."""
    w1, b1, w2, b2, w3, b3 = params
    B = x.shape[0]
    tile_b, num_steps = _choose_grid(B, max_tile_b)

    const = lambda shape: pl.BlockSpec(shape, lambda i: (0, 0))

    out = pl.pallas_call(
        mlp_kernel,
        out_shape=jax.ShapeDtypeStruct((B, OUT_DIM), jnp.float32),
        grid=(num_steps,),
        in_specs=[
            pl.BlockSpec((tile_b, IN_DIM), lambda i: (i, 0)),   # x tile (f32, K=63)
            const((IN_DIM, HIDDEN)),                            # w1 (resident)
            const((1, HIDDEN)),                                 # b1
            const((HIDDEN, HIDDEN)),                            # w2
            const((1, HIDDEN)),                                 # b2
            const((HIDDEN, OUT_DIM)),                           # w3 (3 cols, no padding)
            const((1, OUT_DIM)),                                # b3
        ],
        out_specs=pl.BlockSpec((tile_b, OUT_DIM), lambda i: (i, 0)),
        compiler_params=pltpu.CompilerParams(
            dimension_semantics=("parallel",)),
    )(x, w1, b1, w2, b2, w3, b3)
    return out


def init_params(key):
    """nn.Linear-style init; weights stored [in, out] in bf16, biases in f32."""
    def linear(key, fan_in, fan_out):
        kw, kb = jax.random.split(key)
        bound = 1.0 / jnp.sqrt(fan_in)
        w = jax.random.uniform(kw, (fan_in, fan_out), jnp.float32, -bound, bound)
        b = jax.random.uniform(kb, (1, fan_out), jnp.float32, -bound, bound)
        return w.astype(jnp.bfloat16), b

    k1, k2, k3 = jax.random.split(key, 3)
    w1, b1 = linear(k1, IN_DIM, HIDDEN)
    w2, b2 = linear(k2, HIDDEN, HIDDEN)
    w3, b3 = linear(k3, HIDDEN, OUT_DIM)
    return (w1, b1, w2, b2, w3, b3)


def reference_forward(x, params):
    """Pure-JAX reference using the same bf16 params / f32 accumulation."""
    w1, b1, w2, b2, w3, b3 = params
    f32 = jnp.float32
    h = x.astype(jnp.bfloat16).astype(f32)
    h = jnp.maximum(h @ w1.astype(f32) + b1, 0.0)
    h = h.astype(jnp.bfloat16).astype(f32)
    h = jnp.maximum(h @ w2.astype(f32) + b2, 0.0)
    h = h.astype(jnp.bfloat16).astype(f32)
    return h @ w3.astype(f32) + b3


if __name__ == "__main__":
    key = jax.random.PRNGKey(0)
    kx, kp = jax.random.split(key)
    params = init_params(kp)

    # Small, single-step case.
    B = 16
    x = jax.random.normal(kx, (B, IN_DIM), jnp.float32)
    out = jax.block_until_ready(mlp_forward(x, params))
    ref = reference_forward(x, params)
    assert out.shape == (B, OUT_DIM), out.shape
    assert jnp.allclose(out, ref, atol=2e-3, rtol=2e-3), "mismatch (B=16)"

    # Multi-step case with a ragged batch (exercises partial last block + grid > 1).
    B2 = 200
    x2 = jax.random.normal(kx, (B2, IN_DIM), jnp.float32)
    out2 = jax.block_until_ready(mlp_forward(x2, params, max_tile_b=64))
    ref2 = reference_forward(x2, params)
    assert out2.shape == (B2, OUT_DIM), out2.shape
    assert jnp.allclose(out2, ref2, atol=2e-3, rtol=2e-3), "mismatch (B=200)"

    print("KERNEL_OK")
</pallas_src>

<mosaic_0001>
module attributes {stable_mosaic.version = 11 : i64} {
  func.func @mlp_kernel(%arg0: i32, %arg1: memref<16x63xf32, #tpu.memory_space<vmem>>, %arg2: memref<63x128xbf16, #tpu.memory_space<vmem>>, %arg3: memref<1x128xf32, #tpu.memory_space<vmem>>, %arg4: memref<128x128xbf16, #tpu.memory_space<vmem>>, %arg5: memref<1x128xf32, #tpu.memory_space<vmem>>, %arg6: memref<128x3xbf16, #tpu.memory_space<vmem>>, %arg7: memref<1x3xf32, #tpu.memory_space<vmem>>, %arg8: memref<16x3xf32, #tpu.memory_space<vmem>>) attributes {dimension_semantics = [#tpu.dimension_semantics<parallel>], iteration_bounds = array<i64: 1>, scalar_prefetch = 0 : i64, scratch_operands = 0 : i64, tpu.core_type = #tpu.core_type<tc>, window_params = [{transform_indices = @transform_0, window_bounds = array<i64: 16, 63>}, {pipeline_mode = #tpu.pipeline_mode<synchronous>, transform_indices = @transform_1, window_bounds = array<i64: 63, 128>}, {pipeline_mode = #tpu.pipeline_mode<synchronous>, transform_indices = @transform_2, window_bounds = array<i64: 1, 128>}, {pipeline_mode = #tpu.pipeline_mode<synchronous>, transform_indices = @transform_3, window_bounds = array<i64: 128, 128>}, {pipeline_mode = #tpu.pipeline_mode<synchronous>, transform_indices = @transform_4, window_bounds = array<i64: 1, 128>}, {pipeline_mode = #tpu.pipeline_mode<synchronous>, transform_indices = @transform_5, window_bounds = array<i64: 128, 3>}, {pipeline_mode = #tpu.pipeline_mode<synchronous>, transform_indices = @transform_6, window_bounds = array<i64: 1, 3>}, {transform_indices = @transform_7, window_bounds = array<i64: 16, 3>}]} {
    %c0 = arith.constant 0 : index
    %c0_0 = arith.constant 0 : index
    %0 = vector.load %arg1[%c0, %c0_0] : memref<16x63xf32, #tpu.memory_space<vmem>>, vector<16x63xf32>
    %1 = arith.truncf %0 : vector<16x63xf32> to vector<16x63xbf16>
    %c0_1 = arith.constant 0 : index
    %c0_2 = arith.constant 0 : index
    %2 = vector.load %arg2[%c0_1, %c0_2] : memref<63x128xbf16, #tpu.memory_space<vmem>>, vector<63x128xbf16>
    %cst = arith.constant dense<0.000000e+00> : vector<16x128xf32>
    %3 = tpu.matmul %1, %2, %cst {dimension_numbers = #tpu.dot_dimension_numbers<[1], [0], [0], [1], [0, 0, 1, 1], [], []>} : vector<16x63xbf16>, vector<63x128xbf16>, vector<16x128xf32> -> vector<16x128xf32>
    %c0_3 = arith.constant 0 : index
    %c0_4 = arith.constant 0 : index
    %4 = vector.load %arg3[%c0_3, %c0_4] : memref<1x128xf32, #tpu.memory_space<vmem>>, vector<1x128xf32>
    %5 = vector.broadcast %4 : vector<1x128xf32> to vector<16x128xf32>
    %6 = arith.addf %3, %5 : vector<16x128xf32>
    %cst_5 = arith.constant 0.000000e+00 : f32
    %7 = vector.broadcast %cst_5 : f32 to vector<16x128xf32>
    %8 = arith.maximumf %6, %7 : vector<16x128xf32>
    %9 = arith.truncf %8 : vector<16x128xf32> to vector<16x128xbf16>
    %c0_6 = arith.constant 0 : index
    %c0_7 = arith.constant 0 : index
    %10 = vector.load %arg4[%c0_6, %c0_7] : memref<128x128xbf16, #tpu.memory_space<vmem>>, vector<128x128xbf16>
    %cst_8 = arith.constant dense<0.000000e+00> : vector<16x128xf32>
    %11 = tpu.matmul %9, %10, %cst_8 {dimension_numbers = #tpu.dot_dimension_numbers<[1], [0], [0], [1], [0, 0, 1, 1], [], []>} : vector<16x128xbf16>, vector<128x128xbf16>, vector<16x128xf32> -> vector<16x128xf32>
    %c0_9 = arith.constant 0 : index
    %c0_10 = arith.constant 0 : index
    %12 = vector.load %arg5[%c0_9, %c0_10] : memref<1x128xf32, #tpu.memory_space<vmem>>, vector<1x128xf32>
    %13 = vector.broadcast %12 : vector<1x128xf32> to vector<16x128xf32>
    %14 = arith.addf %11, %13 : vector<16x128xf32>
    %cst_11 = arith.constant 0.000000e+00 : f32
    %15 = vector.broadcast %cst_11 : f32 to vector<16x128xf32>
    %16 = arith.maximumf %14, %15 : vector<16x128xf32>
    %17 = arith.truncf %16 : vector<16x128xf32> to vector<16x128xbf16>
    %c0_12 = arith.constant 0 : index
    %c0_13 = arith.constant 0 : index
    %18 = vector.load %arg6[%c0_12, %c0_13] : memref<128x3xbf16, #tpu.memory_space<vmem>>, vector<128x3xbf16>
    %cst_14 = arith.constant dense<0.000000e+00> : vector<16x3xf32>
    %19 = tpu.matmul %17, %18, %cst_14 {dimension_numbers = #tpu.dot_dimension_numbers<[1], [0], [0], [1], [0, 0, 1, 1], [], []>} : vector<16x128xbf16>, vector<128x3xbf16>, vector<16x3xf32> -> vector<16x3xf32>
    %c0_15 = arith.constant 0 : index
    %c0_16 = arith.constant 0 : index
    %20 = vector.load %arg7[%c0_15, %c0_16] : memref<1x3xf32, #tpu.memory_space<vmem>>, vector<1x3xf32>
    %21 = vector.broadcast %20 : vector<1x3xf32> to vector<16x3xf32>
    %22 = arith.addf %19, %21 : vector<16x3xf32>
    %c0_17 = arith.constant 0 : index
    %c0_18 = arith.constant 0 : index
    %23 = vector.load %arg8[%c0_17, %c0_18] : memref<16x3xf32, #tpu.memory_space<vmem>>, vector<16x3xf32>
    tpu.vector_store %arg8[%c0_17, %c0_18], %22 {strides = array<i32>} : memref<16x3xf32, #tpu.memory_space<vmem>>, vector<16x3xf32>,
    return
  }
  func.func @transform_0(%arg0: i32) -> (i32, i32) {
    %c0_i32 = arith.constant 0 : i32
    %c0_i32_0 = arith.constant 0 : i32
    return %arg0, %c0_i32 : i32, i32
  }
  func.func @transform_1(%arg0: i32) -> (i32, i32) {
    %c0_i32 = arith.constant 0 : i32
    %c0_i32_0 = arith.constant 0 : i32
    %c0_i32_1 = arith.constant 0 : i32
    return %c0_i32, %c0_i32_0 : i32, i32
  }
  func.func @transform_2(%arg0: i32) -> (i32, i32) {
    %c0_i32 = arith.constant 0 : i32
    %c0_i32_0 = arith.constant 0 : i32
    %c0_i32_1 = arith.constant 0 : i32
    return %c0_i32, %c0_i32_0 : i32, i32
  }
  func.func @transform_3(%arg0: i32) -> (i32, i32) {
    %c0_i32 = arith.constant 0 : i32
    %c0_i32_0 = arith.constant 0 : i32
    %c0_i32_1 = arith.constant 0 : i32
    return %c0_i32, %c0_i32_0 : i32, i32
  }
  func.func @transform_4(%arg0: i32) -> (i32, i32) {
    %c0_i32 = arith.constant 0 : i32
    %c0_i32_0 = arith.constant 0 : i32
    %c0_i32_1 = arith.constant 0 : i32
    return %c0_i32, %c0_i32_0 : i32, i32
  }
  func.func @transform_5(%arg0: i32) -> (i32, i32) {
    %c0_i32 = arith.constant 0 : i32
    %c0_i32_0 = arith.constant 0 : i32
    %c0_i32_1 = arith.constant 0 : i32
    return %c0_i32, %c0_i32_0 : i32, i32
  }
  func.func @transform_6(%arg0: i32) -> (i32, i32) {
    %c0_i32 = arith.constant 0 : i32
    %c0_i32_0 = arith.constant 0 : i32
    %c0_i32_1 = arith.constant 0 : i32
    return %c0_i32, %c0_i32_0 : i32, i32
  }
  func.func @transform_7(%arg0: i32) -> (i32, i32) {
    %c0_i32 = arith.constant 0 : i32
    %c0_i32_0 = arith.constant 0 : i32
    return %arg0, %c0_i32 : i32, i32
  }
}

</mosaic_0001>

<bundles_post_ra>
// kernel: tpu_custom_call.1
= control target key start
LH: loop header
LB: loop body
LE: loop exit
PB: predicated region body
PF: predicated region fallthrough
CT: control target
= control target key end

     0   :  { %12 = vsyncpa [#allocation3], 0  ;;  %s703_s0 = inlined_call_operand.hbm [shape: f32[16,63], index: 0, kind: input, shape index: {}]   ;;  %s704_s1 = inlined_call_operand.hbm [shape: bf16[63,128], index: 1, kind: input, shape index: {}]   ;;  %s705_s2 = inlined_call_operand.vmem [shape: f32[1,128], index: 2, kind: input, shape index: {}]   ;;  %s706_s3 = inlined_call_operand.vmem [shape: bf16[128,128], index: 3, kind: input, shape index: {}]   ;;  %s707_s4 = inlined_call_operand.vmem [shape: f32[1,128], index: 4, kind: input, shape index: {}]   ;;  %s708_s5 = inlined_call_operand.vmem [shape: bf16[128,3], index: 5, kind: input, shape index: {}]   ;;  %s709_s6 = inlined_call_operand.vmem [shape: f32[1,3], index: 6, kind: input, shape index: {}]   ;;  %s710_s7 = inlined_call_operand.vmem [shape: f32[16,3], index: 7, kind: output, shape index: {}]  }
   0x1   :  { %13 = vsyncpa [#allocation5], 0  ;;  %s559_s24 = smov [#allocation2]  }
   0x2   :  { %s19_s25 = sshll.u32 %s559_s24, 4  ;;  %s20_s25 = int_to_ptr.vmem [resolvable:$true] %s19_s25 }
   0x3   :  { %s523_s26 = scalar_lea.vmem %s20_s25, 256  ;;  %p528_p1 = scmp.lt.s32.totalorder %s20_s25, %s20_s25 }
   0x4   :  { %p524_p0 = scmp.ne.s32.totalorder %s20_s25, %s523_s26  ;;  %p529_p2 = scmp.lt.s32.totalorder %s523_s26, %s523_s26 }
   0x6   :  { %p530_p3 = por %p529_p2, %p528_p1 }
   0x8   :  { %p531_p4 = pnand %p530_p3, %p524_p0 }
   0xa   :  { %534 = shalt.err (!%p531_p4)
}
   0xb   :  { %s560_s27 = smov 128   ;;  %s561_s28 = smov 8  }
   0xc   :  { %25 = dma.hbm_to_vmem [thread:$0]  %s703_s0, 256, %s20_s25, [#allocation3], %s560_s27, %s560_s27, %s561_s28  }
   0xd   :  { %s562_s8 = smov [#allocation4]  }
   0xe   :  { %s31_s9 = sshll.u32 %s562_s8, 4  ;;  %s32_s9 = int_to_ptr.vmem [resolvable:$true] %s31_s9 }
   0xf   :  { %s543_s10 = scalar_lea.vmem %s32_s9, 512  ;;  %p548_p6 = scmp.lt.s32.totalorder %s32_s9, %s32_s9 }
  0x10   :  { %p544_p5 = scmp.ne.s32.totalorder %s32_s9, %s543_s10  ;;  %p549_p7 = scmp.lt.s32.totalorder %s543_s10, %s543_s10 }
  0x12   :  { %p550_p8 = por %p549_p7, %p548_p6 }
  0x14   :  { %p551_p9 = pnand %p550_p8, %p544_p5 }
  0x16   :  { %554 = shalt.err (!%p551_p9)
}
  0x17   :  { %s563_s11 = smov 64   ;;  %s564_s12 = smov 4  }
  0x18   :  { %37 = dma.hbm_to_vmem [thread:$0]  %s704_s1, 512, %s32_s9, [#allocation5], %s563_s11, %s563_s11, %s564_s12  }
  0x19   :  { %555 = dma.done.wait [#allocation3], 256  }
  0x1a   :  { %556 = vsyncadd [#allocation3], 4294967040 }
  0x1b   :  { %557 = dma.done.wait [#allocation5], 512  }
  0x1c   :  { %558 = vsyncadd [#allocation5], 4294966784  ;;  %vm100_vm0 = vcmask 1046528   ;;  %v565_v0 = vmov 0.0   ;;  %vm566_vm1 = vmmov 0   ;;  %vm101_vm2 = vcmask 1047552  }
  0x1d   :  { %434 = vmatprep.subr.bf16.mxu0 %v565_v0  ;;  %446 = vmatprep.subr.bf16.mxu1 %v565_v0  ;;  %v567_v1 = vmov 65535   ;;  %v495_v4 = vld [vmem:[#allocation4 + $0x18] sm:$0xff]   ;;  %v496_v6 = vld [vmem:[#allocation4 + $0x10] sm:$0xff]   ;;  %v499_v7 = vld [vmem:[%s706_s3 + $0x38] sm:$0xff]   ;;  %vm96_vm3 = vcmask 515072   ;;  %vm378_vm4 = vcmask 23552  }
  0x1e   :  { %442 = vmatprep.mubr.msk.bf16.mxu0 %vm566_vm1, %v565_v0  ;;  %462 = vmatprep.mubr.msk.bf16.mxu1 %vm566_vm1, %v565_v0  ;;  %v102_v2 = vsel %vm100_vm0, 4294967295, %v567_v1  ;;  %v500_v8 = vld [vmem:[%s706_s3 + $0x30] sm:$0xff]   ;;  %v497_v9 = vld [vmem:[#allocation4 + $0x8] sm:$0xff]   ;;  %v501_v10 = vld [vmem:[%s706_s3 + $0x28] sm:$0xff]  }
  0x1f   :  { %v103_v3 = vsel %vm101_vm2, %v102_v2, 0  ;;  %447 = vmatpush3.bf16.msra.mxu1 %v499_v7  ;;  %v498_v11 = vld [vmem:[#allocation4] sm:$0xff]   ;;  %v55_v12 = vld [vmem:[#allocation2] sm:$0xff]  ;;  %v56_v13 = vld [vmem:[#allocation2 + $0x8] sm:$0xff] }
  0x20   :  { %v105_v5 = vand.u32 %v495_v4, %v103_v3  ;;  %448 = vmatprep.subr.bf16.mxu1 %v565_v0  ;;  %v502_v14 = vld [vmem:[%s706_s3 + $0x20] sm:$0xff]   ;;  %v57_v15 = vpack.c.bf16 %v56_v13, %v55_v12  ;;  %v503_v16 = vld [vmem:[%s706_s3 + $0x18] sm:$0xff]   ;;  %v504_v17 = vld [vmem:[%s706_s3 + $0x10] sm:$0xff]  }
  0x21   :  { %v505_v18 = vld [vmem:[%s706_s3 + $0x8] sm:$0xff]   ;;  %v506_v19 = vld [vmem:[%s706_s3] sm:$0xff]   ;;  %v507_v20 = vld [vmem:[%s708_s5 + $0x38] sm:$0xff]  }
  0x22   :  { %435 = vmatpush3.bf16.msra.mxu0 %v105_v5  ;;  %v508_v21 = vld [vmem:[%s708_s5 + $0x30] sm:$0xff]   ;;  %v509_v22 = vld [vmem:[%s708_s5 + $0x28] sm:$0xff]   ;;  %v510_v23 = vld [vmem:[%s708_s5 + $0x20] sm:$0xff]  }
  0x23   :  { %436 = vmatprep.subr.bf16.mxu0 %v565_v0  ;;  %449 = vmatpush3.bf16.msra.mxu1 %v500_v8  ;;  %v511_v24 = vld [vmem:[%s708_s5 + $0x18] sm:$0xff]   ;;  %v387_v25 = vld [vmem:[%s705_s2] ss:$0 sm:$0xff]  ;;  %v512_v35 = vld [vmem:[%s708_s5 + $0x10] sm:$0xff]  }
  0x24   :  { %450 = vmatprep.subr.bf16.mxu1 %v565_v0  ;;  %v513_v36 = vld [vmem:[%s708_s5 + $0x8] sm:$0xff]   ;;  %v514_v37 = vld [vmem:[%s708_s5] sm:$0xff]  }
  0x25   :  { %v393_v38 = vld [vmem:[%s707_s4] ss:$0 sm:$0xff] }
  0x26   :  { %437 = vmatpush3.bf16.msra.mxu0 %v496_v6  ;;  %v402_v48 = vld [vmem:[%s709_s6] ss:$0 sm:$0xff] }
  0x27   :  { %438 = vmatprep.subr.bf16.mxu0 %v565_v0  ;;  %451 = vmatpush3.bf16.msra.mxu1 %v501_v10 }
  0x28   :  { %452 = vmatprep.subr.bf16.mxu1 %v565_v0 }
  0x2a   :  { %439 = vmatpush3.bf16.msra.mxu0 %v497_v9 }
  0x2b   :  { %440 = vmatprep.subr.bf16.mxu0 %v565_v0  ;;  %453 = vmatpush3.bf16.msra.mxu1 %v502_v14 }
  0x2c   :  { %454 = vmatprep.subr.bf16.mxu1 %v565_v0 }
  0x2e   :  { %441 = vmatpush3.bf16.msra.mxu0 %v498_v11 }
  0x2f   :  { %466 = vmatprep.subr.bf16.mxu0 %v565_v0  ;;  %455 = vmatpush3.bf16.msra.mxu1 %v503_v16 }
  0x30   :  { %456 = vmatprep.subr.bf16.mxu1 %v565_v0 }
  0x31   :  { %443 = vmatmul.mubr.msk.bf16.vlgmr.msra.gmra.mxu0 %vm96_vm3, %v57_v15 }
  0x32   :  { %482 = vmatprep.mubr.msk.bf16.mxu0 %vm566_vm1, %v565_v0  ;;  %467 = vmatpush3.bf16.msra.mxu0 %v507_v20 }
  0x33   :  { %457 = vmatpush3.bf16.msra.mxu1 %v504_v17  ;;  %468 = vmatprep.subr.bf16.mxu0 %v565_v0 }
  0x34   :  { %458 = vmatprep.subr.bf16.mxu1 %v565_v0 }
  0x36   :  { %469 = vmatpush3.bf16.msra.mxu0 %v508_v21 }
  0x37   :  { %459 = vmatpush3.bf16.msra.mxu1 %v505_v18  ;;  %470 = vmatprep.subr.bf16.mxu0 %v565_v0 }
  0x38   :  { %460 = vmatprep.subr.bf16.mxu1 %v565_v0 }
  0x3a   :  { %471 = vmatpush3.bf16.msra.mxu0 %v509_v22 }
  0x3b   :  { %461 = vmatpush3.bf16.msra.mxu1 %v506_v19  ;;  %472 = vmatprep.subr.bf16.mxu0 %v565_v0 }
  0x3e   :  { %473 = vmatpush3.bf16.msra.mxu0 %v510_v23 }
  0x3f   :  { %474 = vmatprep.subr.bf16.mxu0 %v565_v0 }
  0x42   :  { %475 = vmatpush3.bf16.msra.mxu0 %v511_v24 }
  0x43   :  { %476 = vmatprep.subr.bf16.mxu0 %v565_v0 }
  0x46   :  { %477 = vmatpush3.bf16.msra.mxu0 %v512_v35 }
  0x47   :  { %478 = vmatprep.subr.bf16.mxu0 %v565_v0 }
  0x4a   :  { %479 = vmatpush3.bf16.msra.mxu0 %v513_v36 }
  0x4b   :  { %480 = vmatprep.subr.bf16.mxu0 %v565_v0 }
  0x4e   :  { %481 = vmatpush3.bf16.msra.mxu0 %v514_v37 }
  0xf1   :  { %v141_v26 = vpop.f32.mrf.mxu0 }
  0xf2   :  { %v142_v28 = vadd.f32 %v387_v25, %v141_v26 }
  0xf3   :  { %v444_v27 = vpop.f32.mrf.mxu0 }
  0xf4   :  { %v148_v32 = vmax.f32 %v142_v28, 0.0 }
  0xf5   :  { %v144_v29 = vpop.f32.mrf.mxu0 }
  0xf6   :  { %v145_v30 = vadd.f32 %v387_v25, %v144_v29 }
  0xf7   :  { %v445_v31 = vpop.f32.mrf.mxu0 }
  0xf8   :  { %v149_v33 = vmax.f32 %v145_v30, 0.0 }
  0xfa   :  { %v150_v34 = vpack.c.bf16 %v149_v33, %v148_v32 }
  0xfc   :  { %463 = vmatmul.mubr.bf16.vlgmr.msra.gmra.mxu1 %v150_v34 }
 0x1bc   :  { %v256_v39 = vpop.f32.mrf.mxu1 }
 0x1bd   :  { %v257_v41 = vadd.f32 %v393_v38, %v256_v39 }
 0x1be   :  { %v464_v40 = vpop.f32.mrf.mxu1 }
 0x1bf   :  { %v263_v45 = vmax.f32 %v257_v41, 0.0 }
 0x1c0   :  { %v259_v42 = vpop.f32.mrf.mxu1 }
 0x1c1   :  { %v260_v43 = vadd.f32 %v393_v38, %v259_v42 }
 0x1c2   :  { %v465_v44 = vpop.f32.mrf.mxu1 }
 0x1c3   :  { %v264_v46 = vmax.f32 %v260_v43, 0.0 }
 0x1c5   :  { %v265_v47 = vpack.c.bf16 %v264_v46, %v263_v45 }
 0x1c7   :  { %483 = vmatmul.mubr.bf16.vlgmr.msra.gmra.mxu0 %v265_v47 }
 0x287   :  { %v371_v49 = vpop.f32.mrf.mxu0 }
 0x288   :  { %v372_v50 = vadd.f32 %v402_v48, %v371_v49 }
 0x289   :  { %v484_v51 = vpop.f32.mrf.mxu0 }
 0x28a   :  { %379 = vst.msk [vmem:[%s710_s7] sm:$0xff] %vm378_vm4, %v372_v50 }
 0x28b   :  { %v374_v52 = vpop.f32.mrf.mxu0 }
 0x28c   :  { %v375_v53 = vadd.f32 %v402_v48, %v374_v52 }
 0x28d   :  { %v485_v54 = vpop.f32.mrf.mxu0 }
 0x28e   :  { %380 = vst.msk [vmem:[%s710_s7 + $0x8] sm:$0xff] %vm378_vm4, %v375_v53 }
 0x28f   :  { %385 = vsyncpa [#allocation3], 1 }
 0x290   :  { %386 = vsyncpa [#allocation5], 1 }

</bundles_post_ra>
